<compile_context>
chip_gen: v6e
topology: v6e:2x2x1
jax: 0.10.0
libtpu: 0.0.40
codegen_flags: <defaults>
</compile_context>

<pallas_src>
import jax
import jax.numpy as jnp
from jax.experimental import pallas as pl
from jax.experimental.pallas import tpu as pltpu

HIDDEN1 = 80
HIDDEN2 = 10
LANE = 128  # lane width for the lane-dense output pad


def mlp_kernel(x_ref, w1_ref, b1_ref, w2_ref, b2_ref, w3_ref, b3_ref, o_ref):
    # fc1 (bf16 MXU, f32 acc) + bias + ReLU in f32   (dropout == identity)
    h = jnp.dot(x_ref[...], w1_ref[...], preferred_element_type=jnp.float32)
    h = jnp.maximum(h + b1_ref[...], 0.0)
    # fc2 + bias + ReLU
    h = jnp.dot(h.astype(jnp.bfloat16), w2_ref[...],
                preferred_element_type=jnp.float32)
    h = jnp.maximum(h + b2_ref[...], 0.0)
    # fc3 (output columns already lane-padded to a multiple of 128)
    y = jnp.dot(h.astype(jnp.bfloat16), w3_ref[...],
                preferred_element_type=jnp.float32)
    o_ref[...] = (y + b3_ref[...]).astype(o_ref.dtype)


def mlp_classifier(x, params, *, tb=512):
    """x: (B, input_dim) float32. params: dict of f32 weights/biases."""
    B, input_dim = x.shape
    w1, b1, w2, b2, w3, b3 = (params[k] for k in ("w1", "b1", "w2", "b2", "w3", "b3"))
    output_dim = w3.shape[1]

    # --- lane-dense output: pad fc3 columns to a multiple of 128 ---
    out_pad = pl.cdiv(output_dim, LANE) * LANE
    w3p = jnp.pad(w3, ((0, 0), (0, out_pad - output_dim)))
    b3p = jnp.pad(b3, ((0, 0), (0, out_pad - output_dim)))

    # --- bf16 streaming operands, f32 accumulation inside the kernel ---
    xb = x.astype(jnp.bfloat16)
    w1b = w1.astype(jnp.bfloat16)
    w2b = w2.astype(jnp.bfloat16)
    w3b = w3p.astype(jnp.bfloat16)

    # --- batch tiling: large tile, pad B so any batch size works ---
    tb_eff = min(tb, pl.cdiv(B, 8) * 8)          # don't over-pad tiny batches
    b_pad = pl.cdiv(B, tb_eff) * tb_eff
    if b_pad != B:
        xb = jnp.pad(xb, ((0, b_pad - B), (0, 0)))

    grid = (b_pad // tb_eff,)
    full = lambda i: (0, 0)  # weights/biases: same (whole-array) block -> resident

    out = pl.pallas_call(
        mlp_kernel,
        out_shape=jax.ShapeDtypeStruct((b_pad, out_pad), jnp.float32),
        grid_spec=pltpu.PrefetchScalarGridSpec(
            num_scalar_prefetch=0,
            grid=grid,
            in_specs=[
                pl.BlockSpec((tb_eff, input_dim), lambda i: (i, 0)),  # x tile (bf16)
                pl.BlockSpec((input_dim, HIDDEN1), full),             # w1 (bf16)
                pl.BlockSpec((1, HIDDEN1), full),                     # b1 (f32)
                pl.BlockSpec((HIDDEN1, HIDDEN2), full),               # w2 (bf16)
                pl.BlockSpec((1, HIDDEN2), full),                     # b2 (f32)
                pl.BlockSpec((HIDDEN2, out_pad), full),               # w3 (bf16, padded)
                pl.BlockSpec((1, out_pad), full),                     # b3 (f32, padded)
            ],
            out_specs=pl.BlockSpec((tb_eff, out_pad), lambda i: (i, 0)),
        ),
        compiler_params=pltpu.CompilerParams(
            dimension_semantics=("parallel",)
        ),
    )(xb, w1b, b1, w2b, b2, w3b, b3p)

    return out[:B, :output_dim]


def init_params(key, input_dim, output_dim):
    """Deterministic synthetic init (uniform, roughly matching nn.Linear scale)."""
    ks = jax.random.split(key, 6)

    def lin(kw, kb, fan_in, fan_out):
        bound = 1.0 / jnp.sqrt(fan_in)
        w = jax.random.uniform(kw, (fan_in, fan_out), jnp.float32, -bound, bound)
        b = jax.random.uniform(kb, (1, fan_out), jnp.float32, -bound, bound)
        return w, b

    w1, b1 = lin(ks[0], ks[1], input_dim, HIDDEN1)
    w2, b2 = lin(ks[2], ks[3], HIDDEN1, HIDDEN2)
    w3, b3 = lin(ks[4], ks[5], HIDDEN2, output_dim)
    return dict(w1=w1, b1=b1, w2=w2, b2=b2, w3=w3, b3=b3)


def mlp_reference(x, p):
    """Reference mirroring the kernel's bf16 operand quantization (f32 math)."""
    bf = jnp.bfloat16
    f32 = jnp.float32
    xb = x.astype(bf).astype(f32)
    w1 = p["w1"].astype(bf).astype(f32)
    w2 = p["w2"].astype(bf).astype(f32)
    w3 = p["w3"].astype(bf).astype(f32)
    h = jnp.maximum(xb @ w1 + p["b1"], 0.0)
    h = h.astype(bf).astype(f32)
    h = jnp.maximum(h @ w2 + p["b2"], 0.0)
    h = h.astype(bf).astype(f32)
    return h @ w3 + p["b3"]


if __name__ == "__main__":
    key = jax.random.PRNGKey(0)
    k_x, k_p = jax.random.split(key)

    batch, input_dim, output_dim = 16, 32, 8
    x = jax.random.normal(k_x, (batch, input_dim), jnp.float32)
    params = init_params(k_p, input_dim, output_dim)

    out = mlp_classifier(x, params)
    out = jax.block_until_ready(out)

    ref = mlp_reference(x, params)
    assert out.shape == (batch, output_dim)
    assert jnp.allclose(out, ref, atol=1e-3, rtol=1e-3)

    print("KERNEL_OK")
</pallas_src>

<mosaic_0001>
module attributes {stable_mosaic.version = 11 : i64} {
  func.func @mlp_kernel(%arg0: i32, %arg1: memref<16x32xbf16, #tpu.memory_space<vmem>>, %arg2: memref<32x80xbf16, #tpu.memory_space<vmem>>, %arg3: memref<1x80xf32, #tpu.memory_space<vmem>>, %arg4: memref<80x10xbf16, #tpu.memory_space<vmem>>, %arg5: memref<1x10xf32, #tpu.memory_space<vmem>>, %arg6: memref<10x128xbf16, #tpu.memory_space<vmem>>, %arg7: memref<1x128xf32, #tpu.memory_space<vmem>>, %arg8: memref<16x128xf32, #tpu.memory_space<vmem>>) attributes {dimension_semantics = [#tpu.dimension_semantics<parallel>], iteration_bounds = array<i64: 1>, scalar_prefetch = 0 : i64, scratch_operands = 0 : i64, tpu.core_type = #tpu.core_type<tc>, window_params = [{transform_indices = @transform_0, window_bounds = array<i64: 16, 32>}, {pipeline_mode = #tpu.pipeline_mode<synchronous>, transform_indices = @transform_1, window_bounds = array<i64: 32, 80>}, {pipeline_mode = #tpu.pipeline_mode<synchronous>, transform_indices = @transform_2, window_bounds = array<i64: 1, 80>}, {pipeline_mode = #tpu.pipeline_mode<synchronous>, transform_indices = @transform_3, window_bounds = array<i64: 80, 10>}, {pipeline_mode = #tpu.pipeline_mode<synchronous>, transform_indices = @transform_4, window_bounds = array<i64: 1, 10>}, {pipeline_mode = #tpu.pipeline_mode<synchronous>, transform_indices = @transform_5, window_bounds = array<i64: 10, 128>}, {pipeline_mode = #tpu.pipeline_mode<synchronous>, transform_indices = @transform_6, window_bounds = array<i64: 1, 128>}, {transform_indices = @transform_7, window_bounds = array<i64: 16, 128>}]} {
    %c0 = arith.constant 0 : index
    %c0_0 = arith.constant 0 : index
    %0 = vector.load %arg1[%c0, %c0_0] : memref<16x32xbf16, #tpu.memory_space<vmem>>, vector<16x32xbf16>
    %c0_1 = arith.constant 0 : index
    %c0_2 = arith.constant 0 : index
    %1 = vector.load %arg2[%c0_1, %c0_2] : memref<32x80xbf16, #tpu.memory_space<vmem>>, vector<32x80xbf16>
    %cst = arith.constant dense<0.000000e+00> : vector<16x80xf32>
    %2 = tpu.matmul %0, %1, %cst {dimension_numbers = #tpu.dot_dimension_numbers<[1], [0], [0], [1], [0, 0, 1, 1], [], []>} : vector<16x32xbf16>, vector<32x80xbf16>, vector<16x80xf32> -> vector<16x80xf32>
    %c0_3 = arith.constant 0 : index
    %c0_4 = arith.constant 0 : index
    %3 = vector.load %arg3[%c0_3, %c0_4] : memref<1x80xf32, #tpu.memory_space<vmem>>, vector<1x80xf32>
    %4 = vector.broadcast %3 : vector<1x80xf32> to vector<16x80xf32>
    %5 = arith.addf %2, %4 : vector<16x80xf32>
    %cst_5 = arith.constant 0.000000e+00 : f32
    %6 = vector.broadcast %cst_5 : f32 to vector<16x80xf32>
    %7 = arith.maximumf %5, %6 : vector<16x80xf32>
    %8 = arith.truncf %7 : vector<16x80xf32> to vector<16x80xbf16>
    %c0_6 = arith.constant 0 : index
    %c0_7 = arith.constant 0 : index
    %9 = vector.load %arg4[%c0_6, %c0_7] : memref<80x10xbf16, #tpu.memory_space<vmem>>, vector<80x10xbf16>
    %cst_8 = arith.constant dense<0.000000e+00> : vector<16x10xf32>
    %10 = tpu.matmul %8, %9, %cst_8 {dimension_numbers = #tpu.dot_dimension_numbers<[1], [0], [0], [1], [0, 0, 1, 1], [], []>} : vector<16x80xbf16>, vector<80x10xbf16>, vector<16x10xf32> -> vector<16x10xf32>
    %c0_9 = arith.constant 0 : index
    %c0_10 = arith.constant 0 : index
    %11 = vector.load %arg5[%c0_9, %c0_10] : memref<1x10xf32, #tpu.memory_space<vmem>>, vector<1x10xf32>
    %12 = vector.broadcast %11 : vector<1x10xf32> to vector<16x10xf32>
    %13 = arith.addf %10, %12 : vector<16x10xf32>
    %cst_11 = arith.constant 0.000000e+00 : f32
    %14 = vector.broadcast %cst_11 : f32 to vector<16x10xf32>
    %15 = arith.maximumf %13, %14 : vector<16x10xf32>
    %16 = arith.truncf %15 : vector<16x10xf32> to vector<16x10xbf16>
    %c0_12 = arith.constant 0 : index
    %c0_13 = arith.constant 0 : index
    %17 = vector.load %arg6[%c0_12, %c0_13] : memref<10x128xbf16, #tpu.memory_space<vmem>>, vector<10x128xbf16>
    %cst_14 = arith.constant dense<0.000000e+00> : vector<16x128xf32>
    %18 = tpu.matmul %16, %17, %cst_14 {dimension_numbers = #tpu.dot_dimension_numbers<[1], [0], [0], [1], [0, 0, 1, 1], [], []>} : vector<16x10xbf16>, vector<10x128xbf16>, vector<16x128xf32> -> vector<16x128xf32>
    %c0_15 = arith.constant 0 : index
    %c0_16 = arith.constant 0 : index
    %19 = vector.load %arg7[%c0_15, %c0_16] : memref<1x128xf32, #tpu.memory_space<vmem>>, vector<1x128xf32>
    %20 = vector.broadcast %19 : vector<1x128xf32> to vector<16x128xf32>
    %21 = arith.addf %18, %20 : vector<16x128xf32>
    %c0_17 = arith.constant 0 : index
    %c0_18 = arith.constant 0 : index
    %22 = vector.load %arg8[%c0_17, %c0_18] : memref<16x128xf32, #tpu.memory_space<vmem>>, vector<16x128xf32>
    tpu.vector_store %arg8[%c0_17, %c0_18], %21 {strides = array<i32>} : memref<16x128xf32, #tpu.memory_space<vmem>>, vector<16x128xf32>,
    return
  }
  func.func @transform_0(%arg0: i32) -> (i32, i32) {
    %c0_i32 = arith.constant 0 : i32
    %c0_i32_0 = arith.constant 0 : i32
    return %arg0, %c0_i32 : i32, i32
  }
  func.func @transform_1(%arg0: i32) -> (i32, i32) {
    %c0_i32 = arith.constant 0 : i32
    %c0_i32_0 = arith.constant 0 : i32
    %c0_i32_1 = arith.constant 0 : i32
    return %c0_i32, %c0_i32_0 : i32, i32
  }
  func.func @transform_2(%arg0: i32) -> (i32, i32) {
    %c0_i32 = arith.constant 0 : i32
    %c0_i32_0 = arith.constant 0 : i32
    %c0_i32_1 = arith.constant 0 : i32
    return %c0_i32, %c0_i32_0 : i32, i32
  }
  func.func @transform_3(%arg0: i32) -> (i32, i32) {
    %c0_i32 = arith.constant 0 : i32
    %c0_i32_0 = arith.constant 0 : i32
    %c0_i32_1 = arith.constant 0 : i32
    return %c0_i32, %c0_i32_0 : i32, i32
  }
  func.func @transform_4(%arg0: i32) -> (i32, i32) {
    %c0_i32 = arith.constant 0 : i32
    %c0_i32_0 = arith.constant 0 : i32
    %c0_i32_1 = arith.constant 0 : i32
    return %c0_i32, %c0_i32_0 : i32, i32
  }
  func.func @transform_5(%arg0: i32) -> (i32, i32) {
    %c0_i32 = arith.constant 0 : i32
    %c0_i32_0 = arith.constant 0 : i32
    %c0_i32_1 = arith.constant 0 : i32
    return %c0_i32, %c0_i32_0 : i32, i32
  }
  func.func @transform_6(%arg0: i32) -> (i32, i32) {
    %c0_i32 = arith.constant 0 : i32
    %c0_i32_0 = arith.constant 0 : i32
    %c0_i32_1 = arith.constant 0 : i32
    return %c0_i32, %c0_i32_0 : i32, i32
  }
  func.func @transform_7(%arg0: i32) -> (i32, i32) {
    %c0_i32 = arith.constant 0 : i32
    %c0_i32_0 = arith.constant 0 : i32
    return %arg0, %c0_i32 : i32, i32
  }
}

</mosaic_0001>

<bundles_post_ra>
// kernel: tpu_custom_call.1
= control target key start
LH: loop header
LB: loop body
LE: loop exit
PB: predicated region body
PF: predicated region fallthrough
CT: control target
= control target key end

     0   :  { %v372_v1 = vmov 0.0   ;;  %vm373_vm0 = vmmov 0   ;;  %vm58_vm1 = vcmask 261120   ;;  %s459_s0 = inlined_call_operand.vmem [shape: bf16[16,32], index: 0, kind: input, shape index: {}]   ;;  %s460_s1 = inlined_call_operand.vmem [shape: bf16[32,80], index: 1, kind: input, shape index: {}]   ;;  %s461_s2 = inlined_call_operand.vmem [shape: f32[1,80], index: 2, kind: input, shape index: {}]   ;;  %s462_s3 = inlined_call_operand.vmem [shape: bf16[80,10], index: 3, kind: input, shape index: {}]   ;;  %s463_s4 = inlined_call_operand.vmem [shape: f32[1,10], index: 4, kind: input, shape index: {}]   ;;  %s464_s5 = inlined_call_operand.vmem [shape: bf16[10,128], index: 5, kind: input, shape index: {}]   ;;  %s465_s6 = inlined_call_operand.vmem [shape: f32[1,128], index: 6, kind: input, shape index: {}]   ;;  %s466_s7 = inlined_call_operand.hbm [shape: f32[16,128], index: 7, kind: output, shape index: {}]  }
   0x1   :  { %v341_v0 = vld [vmem:[%s460_s1 + $0x8] sm:$0xff]   ;;  %308 = vmatprep.subr.bf16.mxu0 %v372_v1  ;;  %316 = vmatprep.subr.bf16.mxu1 %v372_v1  ;;  %v342_v2 = vld [vmem:[%s460_s1] sm:$0xff]   ;;  %v345_v5 = vld [vmem:[%s462_s3 + $0x18] sm:$0xff]  }
   0x2   :  { %309 = vmatpush3.bf16.msra.mxu0 %v341_v0  ;;  %312 = vmatprep.mubr.msk.bf16.mxu0 %vm373_vm0, %v372_v1  ;;  %v344_v3 = vld [vmem:[%s462_s3 + $0x20] sm:$0xff]  }
   0x3   :  { %310 = vmatprep.subr.bf16.mxu0 %v372_v1  ;;  %326 = vmatprep.mubr.msk.bf16.mxu1 %vm373_vm0, %v372_v1  ;;  %v343_v4 = vld [vmem:[%s459_s0] sm:$0xff]  }
   0x4   :  { %317 = vmatpush3.bf16.msra.mxu1 %v344_v3 }
   0x5   :  { %318 = vmatprep.subr.bf16.mxu1 %v372_v1 }
   0x6   :  { %311 = vmatpush3.bf16.msra.mxu0 %v342_v2 }
   0x7   :  { %330 = vmatprep.subr.bf16.mxu0 %v372_v1 }
   0x8   :  { %12 = vsyncpa [#allocation3], 0  ;;  %319 = vmatpush3.bf16.msra.mxu1 %v345_v5  ;;  %v346_v6 = vld [vmem:[%s462_s3 + $0x10] sm:$0xff]   ;;  %v347_v7 = vld [vmem:[%s462_s3 + $0x8] sm:$0xff]   ;;  %vm153_vm2 = vcmask 654336   ;;  %vm219_vm3 = vcmask 1044480  }
   0x9   :  { %313 = vmatmul.mubr.msk.bf16.vlgmr.msra.gmra.mxu0 %vm58_vm1, %v343_v4  ;;  %320 = vmatprep.subr.bf16.mxu1 %v372_v1  ;;  %v348_v8 = vld [vmem:[%s462_s3] sm:$0xff]   ;;  %vm215_vm4 = vcmask 80896   ;;  %s374_s20 = smov [#allocation2]  }
   0xa   :  { %332 = vmatprep.mubr.msk.bf16.mxu0 %vm373_vm0, %v372_v1  ;;  %v282_v9 = vld [vmem:[%s461_s2] ss:$0 sm:$0xff]  ;;  %s271_s21 = sshll.u32 %s374_s20, 4  ;;  %s272_s21 = int_to_ptr.vmem [resolvable:$true] %s271_s21 }
   0xb   :  { %v349_v19 = vld [vmem:[%s464_s5] sm:$0x1f]   ;;  %p355_p1 = scmp.lt.s32.totalorder %s272_s21, %s272_s21 }
   0xc   :  { %321 = vmatpush3.bf16.msra.mxu1 %v346_v6  ;;  %v221_v20 = vsel %vm219_vm3, %v349_v19, 0  ;;  %v287_v21 = vld [vmem:[%s463_s4] ss:$0 sm:$0xff]  ;;  %s350_s4 = scalar_lea.vmem %s272_s21, 256 }
   0xd   :  { %322 = vmatprep.subr.bf16.mxu1 %v372_v1  ;;  %331 = vmatpush3.bf16.msra.mxu0 %v221_v20  ;;  %v294_v31 = vld [vmem:[%s465_s6] ss:$0 sm:$0xff]  ;;  %p351_p0 = scmp.ne.s32.totalorder %s272_s21, %s350_s4  ;;  %p356_p2 = scmp.lt.s32.totalorder %s350_s4, %s350_s4 }
   0xf   :  { %p357_p3 = por %p356_p2, %p355_p1 }
  0x10   :  { %323 = vmatpush3.bf16.msra.mxu1 %v347_v7 }
  0x11   :  { %324 = vmatprep.subr.bf16.mxu1 %v372_v1  ;;  %p358_p4 = pnand %p357_p3, %p351_p0 }
  0x14   :  { %325 = vmatpush3.bf16.msra.mxu1 %v348_v8 }
  0xc9   :  { %v96_v10 = vpop.f32.mrf.mxu0 }
  0xca   :  { %v97_v12 = vadd.f32 %v282_v9, %v96_v10 }
  0xcb   :  { %v314_v11 = vpop.f32.mrf.mxu0 }
  0xcc   :  { %v103_v16 = vmax.f32 %v97_v12, 0.0 }
  0xcd   :  { %v99_v13 = vpop.f32.mrf.mxu0 }
  0xce   :  { %v100_v14 = vadd.f32 %v282_v9, %v99_v13 }
  0xcf   :  { %v315_v15 = vpop.f32.mrf.mxu0 }
  0xd0   :  { %v104_v17 = vmax.f32 %v100_v14, 0.0 }
  0xd2   :  { %v105_v18 = vpack.c.bf16 %v104_v17, %v103_v16 }
  0xd4   :  { %327 = vmatmul.mubr.msk.bf16.vlgmr.msra.gmra.mxu1 %vm153_vm2, %v105_v18 }
 0x194   :  { %v191_v22 = vpop.f32.mrf.mxu1 }
 0x195   :  { %v192_v24 = vadd.f32 %v287_v21, %v191_v22 }
 0x196   :  { %v328_v23 = vpop.f32.mrf.mxu1 }
 0x197   :  { %v198_v28 = vmax.f32 %v192_v24, 0.0 }
 0x198   :  { %v194_v25 = vpop.f32.mrf.mxu1 }
 0x199   :  { %v195_v26 = vadd.f32 %v287_v21, %v194_v25 }
 0x19a   :  { %v329_v27 = vpop.f32.mrf.mxu1 }
 0x19b   :  { %v199_v29 = vmax.f32 %v195_v26, 0.0 }
 0x19d   :  { %v200_v30 = vpack.c.bf16 %v199_v29, %v198_v28 }
 0x19f   :  { %333 = vmatmul.mubr.msk.bf16.vlgmr.msra.gmra.mxu0 %vm215_vm4, %v200_v30 }
 0x25f   :  { %v257_v32 = vpop.f32.mrf.mxu0 }
 0x260   :  { %v258_v33 = vadd.f32 %v294_v31, %v257_v32 }
 0x261   :  { %v334_v34 = vpop.f32.mrf.mxu0 }
 0x262   :  { %264 = vst [vmem:[#allocation2] sm:$0xff] %v258_v33 }
 0x263   :  { %v260_v35 = vpop.f32.mrf.mxu0 }
 0x264   :  { %v261_v36 = vadd.f32 %v294_v31, %v260_v35 }
 0x265   :  { %v335_v37 = vpop.f32.mrf.mxu0 }
 0x266   :  { %265 = vst [vmem:[#allocation2 + $0x8] sm:$0xff] %v261_v36 }
 0x267   :  { %361 = shalt.err (!%p358_p4)
}
 0x268   :  { %s375_s22 = smov 128   ;;  %s376_s6 = smov 8  }
 0x269   :  { %277 = dma.vmem_to_hbm [thread:$0]  %s272_s21, 256, %s466_s7, [#allocation3], %s375_s22, %s375_s22, %s376_s6  }
 0x26a   :  { %370 = dma.done.wait [#allocation3], 256  }
 0x26b   :  { %371 = vsyncadd [#allocation3], 4294967040 }
 0x26c   :  { %281 = vsyncpa [#allocation3], 1 }

</bundles_post_ra>
